<compile_context>
chip_gen: v6e
topology: v6e:2x2x1
jax: 0.10.0
libtpu: 0.0.40
codegen_flags: <defaults>
</compile_context>

<pallas_src>
import jax
import jax.numpy as jnp
from jax.experimental import pallas as pl
from jax.experimental.pallas import tpu as pltpu

EMB = 32      # embedding_dim
ATT_H = 16    # attention hidden size (Linear(2E, 16))
PRED_H = 8    # predict hidden size   (Linear(3E, 8))


def _round_up(x, m):
    return (x + m - 1) // m * m


# --------------------------------------------------------------------------
# Weight slab: all tiny weights packed into one (rows, 128) f32 array.
# --------------------------------------------------------------------------
def _slab_offsets(M, E):
    """Static row offsets (Python ints) of every packed weight in the slab."""
    def up8(r):
        return _round_up(r, 8)
    off = {}
    r = 0
    off['w1'] = r;  r = up8(r + M * E)        # block-diag W1a   (M*E, M*ATT_H)
    off['w1b'] = r; r = up8(r + E)            # member-tiled W1b (E,   M*ATT_H)
    off['b1'] = r;  r = up8(r + 1)            # tiled b1         (1,   M*ATT_H)
    off['w2'] = r;  r = up8(r + M * ATT_H)    # block W2         (M*ATT_H, M)
    off['b2'] = r;  r = up8(r + 1)            # b2               (1, M)
    off['exp'] = r; r = up8(r + M)            # attention expand (M, M*E)
    off['sum'] = r; r = up8(r + M * E)        # member-sum       (M*E, E)
    off['pw1'] = r; r = up8(r + 3 * E)        # predict W1       (3E, PRED_H)
    off['pb1'] = r; r = r + 1                 # predict b1       (1, PRED_H)
    off['pb2'] = r; r = up8(r + 1)            # predict b2 row   (1, cols)
    off['pw2'] = r; r = up8(r + PRED_H)       # predict W2 rep   (PRED_H, cols)
    off['rows'] = r
    off['cols'] = max(128, M * E, M * ATT_H)
    return off


def build_weight_slab(params, M):
    """Pack all MLP weights into one f32 slab (done once on the host/XLA side)."""
    E = EMB
    off = _slab_offsets(M, E)
    R, C = off['rows'], off['cols']
    slab = jnp.zeros((R, C), jnp.float32)

    w1a = params['att_w1a']                     # (E, ATT_H)
    w1b = params['att_w1b']                     # (E, ATT_H)
    b1 = params['att_b1'].reshape(1, ATT_H)
    w2 = params['att_w2'].reshape(ATT_H)
    b2 = params['att_b2'].reshape(())
    pw1 = params['pred_w1']                     # (3E, PRED_H)
    pb1 = params['pred_b1'].reshape(1, PRED_H)
    pw2 = params['pred_w2'].reshape(PRED_H)
    pb2 = params['pred_b2'].reshape(())

    # Block-diagonal W1a so all M member slots are handled by ONE 2D matmul.
    w1_blk = jnp.zeros((M * E, M * ATT_H), jnp.float32)
    for m in range(M):
        w1_blk = w1_blk.at[m * E:(m + 1) * E, m * ATT_H:(m + 1) * ATT_H].set(w1a)
    w1b_tiled = jnp.tile(w1b, (1, M))           # (E, M*ATT_H)  item side, hoisted
    b1_tiled = jnp.tile(b1, (1, M))             # (1, M*ATT_H)
    # Block W2: column m holds w2 in rows m*ATT_H:(m+1)*ATT_H.
    w2_blk = jnp.zeros((M * ATT_H, M), jnp.float32)
    for m in range(M):
        w2_blk = w2_blk.at[m * ATT_H:(m + 1) * ATT_H, m].set(w2)
    # Expand: att (B,M) @ expand -> (B, M*E) with att[b,m] repeated over E lanes.
    expand = jnp.zeros((M, M * E), jnp.float32)
    for m in range(M):
        expand = expand.at[m, m * E:(m + 1) * E].set(1.0)
    # Member-sum: (weighted members) (B, M*E) @ summat -> (B, E).
    summat = jnp.tile(jnp.eye(E, dtype=jnp.float32), (M, 1))
    # Predict second layer replicated across all lanes -> lane-dense output store.
    pw2_rep = jnp.tile(pw2.reshape(PRED_H, 1), (1, C))
    pb2_row = jnp.full((1, C), pb2, jnp.float32)

    def put(s, r0, block):
        rr, cc = block.shape
        return s.at[r0:r0 + rr, 0:cc].set(block)

    slab = put(slab, off['w1'], w1_blk)
    slab = put(slab, off['w1b'], w1b_tiled)
    slab = put(slab, off['b1'], b1_tiled)
    slab = put(slab, off['w2'], w2_blk)
    slab = put(slab, off['b2'], jnp.full((1, M), b2, jnp.float32))
    slab = put(slab, off['exp'], expand)
    slab = put(slab, off['sum'], summat)
    slab = put(slab, off['pw1'], pw1)
    slab = put(slab, off['pb1'], pb1)
    slab = put(slab, off['pb2'], pb2_row)
    slab = put(slab, off['pw2'], pw2_rep)
    return slab, off


# --------------------------------------------------------------------------
# Pallas kernels
# --------------------------------------------------------------------------
def _make_grp_kernel(M, E, off):
    """Group path: attention over packed members + fused predict layer."""
    MAH = M * ATT_H
    ME = M * E

    def kernel(mem_ref, item_ref, grp_ref, wg_ref, y_ref):
        x = mem_ref[...].astype(jnp.float32)          # (bB, M*E) lane-dense
        it = item_ref[...].astype(jnp.float32)        # (bB, E)
        gp = grp_ref[...].astype(jnp.float32)         # (bB, E)

        w1_blk = wg_ref[off['w1']:off['w1'] + ME, 0:MAH]
        w1b_t = wg_ref[off['w1b']:off['w1b'] + E, 0:MAH]
        b1_t = wg_ref[off['b1']:off['b1'] + 1, 0:MAH]
        w2_blk = wg_ref[off['w2']:off['w2'] + MAH, 0:M]
        b2 = wg_ref[off['b2']:off['b2'] + 1, 0:M]
        expand = wg_ref[off['exp']:off['exp'] + M, 0:ME]
        summat = wg_ref[off['sum']:off['sum'] + ME, 0:E]
        pw1 = wg_ref[off['pw1']:off['pw1'] + 3 * E, 0:PRED_H]
        pb1 = wg_ref[off['pb1']:off['pb1'] + 1, 0:PRED_H]
        pb2 = wg_ref[off['pb2']:off['pb2'] + 1, :]
        pw2r = wg_ref[off['pw2']:off['pw2'] + PRED_H, :]

        # AttentionLayer hidden for all member slots in one flat matmul
        # (block-diagonal W1a) + hoisted item path (member-tiled W1b).
        h = (jnp.dot(x, w1_blk, preferred_element_type=jnp.float32)
             + jnp.dot(it, w1b_t, preferred_element_type=jnp.float32)
             + b1_t)                                   # (bB, M*ATT_H)
        h = jnp.maximum(h, 0.0)
        s = jnp.dot(h, w2_blk, preferred_element_type=jnp.float32) + b2   # (bB, M)

        # softmax over this group's members (torch: softmax(out.view(1,-1)))
        s = s - jnp.max(s, axis=-1, keepdims=True)
        e = jnp.exp(s)
        att = e * pl.reciprocal(jnp.sum(e, axis=-1, keepdims=True), approx=True)

        # g_embeds_with_attention = at_wt @ members  (via expand + sum matmuls)
        att_x = jnp.dot(att, expand, preferred_element_type=jnp.float32)  # (bB, M*E)
        g_att = jnp.dot(att_x * x, summat, preferred_element_type=jnp.float32)
        g = g_att + gp                                 # (bB, E)

        # PredictLayer on cat(elem, g, item) -- single fused K=3E matmul.
        elem = g * it
        xin = jnp.concatenate([elem, g, it], axis=-1)  # (bB, 3E)
        hp = jnp.maximum(
            jnp.dot(xin, pw1, preferred_element_type=jnp.float32) + pb1, 0.0)
        # 8->1 projection replicated over all lanes -> lane-dense store.
        logit = jnp.dot(hp, pw2r, preferred_element_type=jnp.float32) + pb2
        y_ref[...] = jax.nn.sigmoid(logit).astype(y_ref.dtype)

    return kernel


def _make_usr_kernel(E, off):
    """User path: elementwise mul + fused predict layer + sigmoid."""

    def kernel(usr_ref, item_ref, wg_ref, y_ref):
        u = usr_ref[...].astype(jnp.float32)
        it = item_ref[...].astype(jnp.float32)
        pw1 = wg_ref[off['pw1']:off['pw1'] + 3 * E, 0:PRED_H]
        pb1 = wg_ref[off['pb1']:off['pb1'] + 1, 0:PRED_H]
        pb2 = wg_ref[off['pb2']:off['pb2'] + 1, :]
        pw2r = wg_ref[off['pw2']:off['pw2'] + PRED_H, :]

        elem = u * it
        xin = jnp.concatenate([elem, u, it], axis=-1)
        hp = jnp.maximum(
            jnp.dot(xin, pw1, preferred_element_type=jnp.float32) + pb1, 0.0)
        logit = jnp.dot(hp, pw2r, preferred_element_type=jnp.float32) + pb2
        y_ref[...] = jax.nn.sigmoid(logit).astype(y_ref.dtype)

    return kernel


# --------------------------------------------------------------------------
# pallas_call wrappers (batch-tiled grid, resident weight slab)
# --------------------------------------------------------------------------
def _grp_call(slab, off, members, item_e, grp_e, *, M, block_B):
    B_pad, ME = members.shape
    E = item_e.shape[1]
    rows, cols = slab.shape
    nb = B_pad // block_B
    kernel = _make_grp_kernel(M, E, off)
    return pl.pallas_call(
        kernel,
        out_shape=jax.ShapeDtypeStruct((B_pad, cols), jnp.float32),
        grid=(nb,),
        in_specs=[
            pl.BlockSpec((block_B, ME), lambda i: (i, 0)),
            pl.BlockSpec((block_B, E), lambda i: (i, 0)),
            pl.BlockSpec((block_B, E), lambda i: (i, 0)),
            pl.BlockSpec((rows, cols), lambda i: (0, 0)),   # weights stay resident
        ],
        out_specs=pl.BlockSpec((block_B, cols), lambda i: (i, 0)),
        compiler_params=pltpu.CompilerParams(
            dimension_semantics=("parallel",),
            vmem_limit_bytes=32 * 1024 * 1024),
    )(members, item_e, grp_e, slab)


def _usr_call(slab, off, user_e, item_e, *, block_B):
    B_pad, E = user_e.shape
    rows, cols = slab.shape
    nb = B_pad // block_B
    kernel = _make_usr_kernel(E, off)
    return pl.pallas_call(
        kernel,
        out_shape=jax.ShapeDtypeStruct((B_pad, cols), jnp.float32),
        grid=(nb,),
        in_specs=[
            pl.BlockSpec((block_B, E), lambda i: (i, 0)),
            pl.BlockSpec((block_B, E), lambda i: (i, 0)),
            pl.BlockSpec((rows, cols), lambda i: (0, 0)),
        ],
        out_specs=pl.BlockSpec((block_B, cols), lambda i: (i, 0)),
        compiler_params=pltpu.CompilerParams(
            dimension_semantics=("parallel",),
            vmem_limit_bytes=32 * 1024 * 1024),
    )(user_e, item_e, slab)


def agree_forward(params, group_member_dict, group_inputs, user_inputs, item_inputs):
    """Mirrors AGREE.forward branching: group path if user_inputs is None."""
    if 'wg_slab' not in params:
        M0 = len(next(iter(group_member_dict.values())))
        params['wg_slab'], params['slab_off'] = build_weight_slab(params, M0)
    slab, off = params['wg_slab'], params['slab_off']

    item_ids = [int(t) for t in item_inputs]
    B = len(item_ids)
    block_B = min(512, _round_up(max(B, 1), 8))
    B_pad = _round_up(B, block_B)
    pad = B_pad - B

    item_ids_p = jnp.asarray(item_ids + [0] * pad, jnp.int32)
    item_e = jnp.take(params['item_emb'], item_ids_p, axis=0)           # (B_pad, E) bf16

    if group_inputs is not None and user_inputs is None:
        # TODO(synk): variable-size groups need a member mask (padded member scores
        # -> -inf before softmax); this script assumes a fixed members-per-group.
        M = len(next(iter(group_member_dict.values())))
        member_ids = [group_member_dict[int(g)] for g in group_inputs] + [[0] * M] * pad
        member_ids = jnp.asarray(member_ids, jnp.int32)                 # (B_pad, M)
        members = jnp.take(params['user_emb'], member_ids, axis=0)      # (B_pad, M, E)
        members = members.reshape(B_pad, M * EMB)                       # lane-dense pack
        group_ids = jnp.asarray([int(g) for g in group_inputs] + [0] * pad, jnp.int32)
        grp_e = jnp.take(params['group_emb'], group_ids, axis=0)        # (B_pad, E)
        out = _grp_call(slab, off, members, item_e, grp_e, M=M, block_B=block_B)
    else:
        user_ids = jnp.asarray([int(u) for u in user_inputs] + [0] * pad, jnp.int32)
        user_e = jnp.take(params['user_emb'], user_ids, axis=0)         # (B_pad, E)
        out = _usr_call(slab, off, user_e, item_e, block_B=block_B)

    return out[:B, 0:1]                                                 # (B, 1) f32


# --------------------------------------------------------------------------
# Deterministic parameter init (shapes follow the module's __init__)
# --------------------------------------------------------------------------
def init_params(key, num_users, num_items, num_groups, emb):
    ks = jax.random.split(key, 12)

    def xavier_normal(k, num, dim):
        std = (2.0 / (num + dim)) ** 0.5
        return std * jax.random.normal(k, (num, dim), jnp.float32)

    # Embeddings (nn.init.xavier_normal_), stored bf16 for DMA bandwidth.
    user_emb = xavier_normal(ks[0], num_users, emb).astype(jnp.bfloat16)
    item_emb = xavier_normal(ks[1], num_items, emb).astype(jnp.bfloat16)
    group_emb = xavier_normal(ks[2], num_groups, emb).astype(jnp.bfloat16)

    # AttentionLayer: Linear(2E,16) -> ReLU -> Dropout(0) -> Linear(16,1)
    att_w1 = jax.random.normal(ks[3], (2 * emb, ATT_H), jnp.float32)
    att_b1 = 0.01 * jax.random.normal(ks[4], (ATT_H,), jnp.float32)
    att_w2 = jax.random.normal(ks[5], (ATT_H,), jnp.float32)
    att_b2 = 0.01 * jax.random.normal(ks[6], (), jnp.float32)

    # PredictLayer: Linear(3E,8) -> ReLU -> Dropout(0) -> Linear(8,1)
    pred_w1 = jax.random.normal(ks[7], (3 * emb, PRED_H), jnp.float32)
    pred_b1 = 0.01 * jax.random.normal(ks[8], (PRED_H,), jnp.float32)
    pred_w2 = jax.random.normal(ks[9], (PRED_H,), jnp.float32)
    pred_b2 = 0.01 * jax.random.normal(ks[10], (), jnp.float32)

    return dict(
        user_emb=user_emb, item_emb=item_emb, group_emb=group_emb,
        att_w1a=att_w1[:emb], att_w1b=att_w1[emb:], att_b1=att_b1,
        att_w2=att_w2, att_b2=att_b2,
        pred_w1=pred_w1, pred_b1=pred_b1, pred_w2=pred_w2, pred_b2=pred_b2,
    )


# --------------------------------------------------------------------------
if __name__ == "__main__":
    num_users, num_items, num_groups = 10, 12, 5
    members_per_group = 4   # fixed group size so shapes stay static
    batch = 2

    key = jax.random.PRNGKey(0)
    pkey, mkey = jax.random.split(key)
    params = init_params(pkey, num_users, num_items, num_groups, EMB)

    # group_member_dict: group id -> list of member user ids (fixed size)
    member_tbl = jax.random.randint(
        mkey, (num_groups, members_per_group), 0, num_users)
    group_member_dict = {g: [int(u) for u in member_tbl[g]] for g in range(num_groups)}

    # Pack all MLP weights into one VMEM-resident slab (done once).
    params['wg_slab'], params['slab_off'] = build_weight_slab(params, members_per_group)

    group_inputs = [1, 3]
    item_inputs = [2, 7]
    user_inputs = [0, 5]

    # Group path (group_inputs is not None, user_inputs is None)
    y_grp = agree_forward(params, group_member_dict, group_inputs, None, item_inputs)
    # User path
    y_usr = agree_forward(params, group_member_dict, None, user_inputs, item_inputs)

    jax.block_until_ready((y_grp, y_usr))
    assert y_grp.shape == (batch, 1) and y_usr.shape == (batch, 1)
    assert bool(jnp.all(jnp.isfinite(y_grp))) and bool(jnp.all(jnp.isfinite(y_usr)))
    assert bool(jnp.all((y_grp >= 0) & (y_grp <= 1)))
    assert bool(jnp.all((y_usr >= 0) & (y_usr <= 1)))
    print("KERNEL_OK")
</pallas_src>

<mosaic_0001>
module attributes {stable_mosaic.version = 11 : i64} {
  func.func @kernel(%arg0: i32, %arg1: memref<8x128xbf16, #tpu.memory_space<vmem>>, %arg2: memref<8x32xbf16, #tpu.memory_space<vmem>>, %arg3: memref<8x32xbf16, #tpu.memory_space<vmem>>, %arg4: memref<488x128xf32, #tpu.memory_space<vmem>>, %arg5: memref<8x128xf32, #tpu.memory_space<vmem>>) attributes {dimension_semantics = [#tpu.dimension_semantics<parallel>], iteration_bounds = array<i64: 1>, scalar_prefetch = 0 : i64, scratch_operands = 0 : i64, tpu.core_type = #tpu.core_type<tc>, window_params = [{transform_indices = @transform_0, window_bounds = array<i64: 8, 128>}, {transform_indices = @transform_1, window_bounds = array<i64: 8, 32>}, {transform_indices = @transform_2, window_bounds = array<i64: 8, 32>}, {pipeline_mode = #tpu.pipeline_mode<synchronous>, transform_indices = @transform_3, window_bounds = array<i64: 488, 128>}, {transform_indices = @transform_4, window_bounds = array<i64: 8, 128>}]} {
    %c0 = arith.constant 0 : index
    %c0_0 = arith.constant 0 : index
    %0 = vector.load %arg1[%c0, %c0_0] : memref<8x128xbf16, #tpu.memory_space<vmem>>, vector<8x128xbf16>
    %1 = arith.extf %0 : vector<8x128xbf16> to vector<8x128xf32>
    %c0_1 = arith.constant 0 : index
    %c0_2 = arith.constant 0 : index
    %2 = vector.load %arg2[%c0_1, %c0_2] : memref<8x32xbf16, #tpu.memory_space<vmem>>, vector<8x32xbf16>
    %3 = arith.extf %2 : vector<8x32xbf16> to vector<8x32xf32>
    %c0_3 = arith.constant 0 : index
    %c0_4 = arith.constant 0 : index
    %4 = vector.load %arg3[%c0_3, %c0_4] : memref<8x32xbf16, #tpu.memory_space<vmem>>, vector<8x32xbf16>
    %5 = arith.extf %4 : vector<8x32xbf16> to vector<8x32xf32>
    %c0_5 = arith.constant 0 : index
    %c0_6 = arith.constant 0 : index
    %6 = vector.load %arg4[%c0_5, %c0_6] : memref<488x128xf32, #tpu.memory_space<vmem>>, vector<128x64xf32>
    %c128 = arith.constant 128 : index
    %c0_7 = arith.constant 0 : index
    %7 = vector.load %arg4[%c128, %c0_7] : memref<488x128xf32, #tpu.memory_space<vmem>>, vector<32x64xf32>
    %c160 = arith.constant 160 : index
    %c0_8 = arith.constant 0 : index
    %8 = vector.load %arg4[%c160, %c0_8] : memref<488x128xf32, #tpu.memory_space<vmem>>, vector<1x64xf32>
    %c168 = arith.constant 168 : index
    %c0_9 = arith.constant 0 : index
    %9 = vector.load %arg4[%c168, %c0_9] : memref<488x128xf32, #tpu.memory_space<vmem>>, vector<64x4xf32>
    %c232 = arith.constant 232 : index
    %c0_10 = arith.constant 0 : index
    %10 = vector.load %arg4[%c232, %c0_10] : memref<488x128xf32, #tpu.memory_space<vmem>>, vector<1x4xf32>
    %c240 = arith.constant 240 : index
    %c0_11 = arith.constant 0 : index
    %11 = vector.load %arg4[%c240, %c0_11] : memref<488x128xf32, #tpu.memory_space<vmem>>, vector<4x128xf32>
    %c248 = arith.constant 248 : index
    %c0_12 = arith.constant 0 : index
    %12 = vector.load %arg4[%c248, %c0_12] : memref<488x128xf32, #tpu.memory_space<vmem>>, vector<128x32xf32>
    %c376 = arith.constant 376 : index
    %c0_13 = arith.constant 0 : index
    %13 = vector.load %arg4[%c376, %c0_13] : memref<488x128xf32, #tpu.memory_space<vmem>>, vector<96x8xf32>
    %c472 = arith.constant 472 : index
    %c0_14 = arith.constant 0 : index
    %14 = vector.load %arg4[%c472, %c0_14] : memref<488x128xf32, #tpu.memory_space<vmem>>, vector<1x8xf32>
    %c473 = arith.constant 473 : index
    %c0_15 = arith.constant 0 : index
    %15 = vector.load %arg4[%c473, %c0_15] : memref<488x128xf32, #tpu.memory_space<vmem>>, vector<1x128xf32>
    %c480 = arith.constant 480 : index
    %c0_16 = arith.constant 0 : index
    %16 = vector.load %arg4[%c480, %c0_16] : memref<488x128xf32, #tpu.memory_space<vmem>>, vector<8x128xf32>
    %cst = arith.constant dense<0.000000e+00> : vector<8x64xf32>
    %17 = tpu.matmul %1, %6, %cst {dimension_numbers = #tpu.dot_dimension_numbers<[1], [0], [0], [1], [0, 0, 1, 1], [], []>} : vector<8x128xf32>, vector<128x64xf32>, vector<8x64xf32> -> vector<8x64xf32>
    %cst_17 = arith.constant dense<0.000000e+00> : vector<8x64xf32>
    %18 = tpu.matmul %3, %7, %cst_17 {dimension_numbers = #tpu.dot_dimension_numbers<[1], [0], [0], [1], [0, 0, 1, 1], [], []>} : vector<8x32xf32>, vector<32x64xf32>, vector<8x64xf32> -> vector<8x64xf32>
    %19 = arith.addf %17, %18 : vector<8x64xf32>
    %20 = vector.broadcast %8 : vector<1x64xf32> to vector<8x64xf32>
    %21 = arith.addf %19, %20 : vector<8x64xf32>
    %cst_18 = arith.constant 0.000000e+00 : f32
    %22 = vector.broadcast %cst_18 : f32 to vector<8x64xf32>
    %23 = arith.maximumf %21, %22 : vector<8x64xf32>
    %cst_19 = arith.constant dense<0.000000e+00> : vector<8x4xf32>
    %24 = tpu.matmul %23, %9, %cst_19 {dimension_numbers = #tpu.dot_dimension_numbers<[1], [0], [0], [1], [0, 0, 1, 1], [], []>} : vector<8x64xf32>, vector<64x4xf32>, vector<8x4xf32> -> vector<8x4xf32>
    %25 = vector.broadcast %10 : vector<1x4xf32> to vector<8x4xf32>
    %26 = arith.addf %24, %25 : vector<8x4xf32>
    %cst_20 = arith.constant dense<0xFF800000> : vector<8xf32>
    %27 = vector.multi_reduction <maximumf>, %26, %cst_20 [1] : vector<8x4xf32> to vector<8xf32>
    %28 = vector.shape_cast %27 : vector<8xf32> to vector<8x1xf32>
    %29 = vector.broadcast %28 : vector<8x1xf32> to vector<8x4xf32>
    %30 = arith.subf %26, %29 : vector<8x4xf32>
    %31 = math.exp %30 : vector<8x4xf32>
    %cst_21 = arith.constant dense<0.000000e+00> : vector<8xf32>
    %32 = vector.multi_reduction <add>, %31, %cst_21 [1] : vector<8x4xf32> to vector<8xf32>
    %33 = vector.shape_cast %32 : vector<8xf32> to vector<8x1xf32>
    %34 = tpu.reciprocal %33 {approx = true} : vector<8x1xf32> -> vector<8x1xf32>
    %35 = vector.broadcast %34 : vector<8x1xf32> to vector<8x4xf32>
    %36 = arith.mulf %31, %35 : vector<8x4xf32>
    %cst_22 = arith.constant dense<0.000000e+00> : vector<8x128xf32>
    %37 = tpu.matmul %36, %11, %cst_22 {dimension_numbers = #tpu.dot_dimension_numbers<[1], [0], [0], [1], [0, 0, 1, 1], [], []>} : vector<8x4xf32>, vector<4x128xf32>, vector<8x128xf32> -> vector<8x128xf32>
    %38 = arith.mulf %37, %1 : vector<8x128xf32>
    %cst_23 = arith.constant dense<0.000000e+00> : vector<8x32xf32>
    %39 = tpu.matmul %38, %12, %cst_23 {dimension_numbers = #tpu.dot_dimension_numbers<[1], [0], [0], [1], [0, 0, 1, 1], [], []>} : vector<8x128xf32>, vector<128x32xf32>, vector<8x32xf32> -> vector<8x32xf32>
    %40 = arith.addf %39, %5 : vector<8x32xf32>
    %41 = arith.mulf %40, %3 : vector<8x32xf32>
    %42 = tpu.concatenate %41, %40, %3 in 1 : vector<8x32xf32>, vector<8x32xf32>, vector<8x32xf32> -> vector<8x96xf32>
    %cst_24 = arith.constant dense<0.000000e+00> : vector<8x8xf32>
    %43 = tpu.matmul %42, %13, %cst_24 {dimension_numbers = #tpu.dot_dimension_numbers<[1], [0], [0], [1], [0, 0, 1, 1], [], []>} : vector<8x96xf32>, vector<96x8xf32>, vector<8x8xf32> -> vector<8x8xf32>
    %44 = vector.broadcast %14 : vector<1x8xf32> to vector<8x8xf32>
    %45 = arith.addf %43, %44 : vector<8x8xf32>
    %cst_25 = arith.constant 0.000000e+00 : f32
    %46 = vector.broadcast %cst_25 : f32 to vector<8x8xf32>
    %47 = arith.maximumf %45, %46 : vector<8x8xf32>
    %cst_26 = arith.constant dense<0.000000e+00> : vector<8x128xf32>
    %48 = tpu.matmul %47, %16, %cst_26 {dimension_numbers = #tpu.dot_dimension_numbers<[1], [0], [0], [1], [0, 0, 1, 1], [], []>} : vector<8x8xf32>, vector<8x128xf32>, vector<8x128xf32> -> vector<8x128xf32>
    %49 = vector.broadcast %15 : vector<1x128xf32> to vector<8x128xf32>
    %50 = arith.addf %48, %49 : vector<8x128xf32>
    %51 = arith.negf %50 : vector<8x128xf32>
    %52 = math.exp %51 : vector<8x128xf32>
    %cst_27 = arith.constant 1.000000e+00 : f32
    %53 = vector.broadcast %cst_27 : f32 to vector<8x128xf32>
    %54 = arith.addf %53, %52 : vector<8x128xf32>
    %55 = arith.divf %53, %54 : vector<8x128xf32>
    %c0_28 = arith.constant 0 : index
    %c0_29 = arith.constant 0 : index
    %56 = vector.load %arg5[%c0_28, %c0_29] : memref<8x128xf32, #tpu.memory_space<vmem>>, vector<8x128xf32>
    tpu.vector_store %arg5[%c0_28, %c0_29], %55 {strides = array<i32>} : memref<8x128xf32, #tpu.memory_space<vmem>>, vector<8x128xf32>,
    return
  }
  func.func @transform_0(%arg0: i32) -> (i32, i32) {
    %c0_i32 = arith.constant 0 : i32
    %c0_i32_0 = arith.constant 0 : i32
    return %arg0, %c0_i32 : i32, i32
  }
  func.func @transform_1(%arg0: i32) -> (i32, i32) {
    %c0_i32 = arith.constant 0 : i32
    %c0_i32_0 = arith.constant 0 : i32
    return %arg0, %c0_i32 : i32, i32
  }
  func.func @transform_2(%arg0: i32) -> (i32, i32) {
    %c0_i32 = arith.constant 0 : i32
    %c0_i32_0 = arith.constant 0 : i32
    return %arg0, %c0_i32 : i32, i32
  }
  func.func @transform_3(%arg0: i32) -> (i32, i32) {
    %c0_i32 = arith.constant 0 : i32
    %c0_i32_0 = arith.constant 0 : i32
    %c0_i32_1 = arith.constant 0 : i32
    return %c0_i32, %c0_i32_0 : i32, i32
  }
  func.func @transform_4(%arg0: i32) -> (i32, i32) {
    %c0_i32 = arith.constant 0 : i32
    %c0_i32_0 = arith.constant 0 : i32
    return %arg0, %c0_i32 : i32, i32
  }
}

</mosaic_0001>

<bundles_post_ra>
// kernel: tpu_custom_call.1
= control target key start
LH: loop header
LB: loop body
LE: loop exit
PB: predicated region body
PF: predicated region fallthrough
CT: control target
= control target key end

     0   :  { %9 = vsyncpa [#allocation3], 0  ;;  %s1196_s0 = inlined_call_operand.hbm [shape: bf16[8,128], index: 0, kind: input, shape index: {}]   ;;  %s1197_s1 = inlined_call_operand.hbm [shape: bf16[8,32], index: 1, kind: input, shape index: {}]   ;;  %s1198_s2 = inlined_call_operand.hbm [shape: bf16[8,32], index: 2, kind: input, shape index: {}]   ;;  %s1199_s3 = inlined_call_operand.hbm [shape: f32[488,128], index: 3, kind: input, shape index: {}]   ;;  %s1200_s4 = inlined_call_operand.hbm [shape: f32[8,128], index: 4, kind: output, shape index: {}]  }
   0x1   :  { %10 = vsyncpa [#allocation6], 0 }
   0x2   :  { %11 = vsyncpa [#allocation9], 0 }
   0x3   :  { %12 = vsyncpa [#allocation4], 0  ;;  %s1054_s15 = smov [#allocation5]   ;;  %s1055_s17 = smov [#allocation2]  }
   0x4   :  { %s29_s16 = sshll.u32 %s1054_s15, 4  ;;  %s19_s18 = sshll.u32 %s1055_s17, 4  ;;  %s30_s16 = int_to_ptr.vmem [resolvable:$true] %s29_s16  ;;  %s20_s18 = int_to_ptr.vmem [resolvable:$true] %s19_s18 }
   0x5   :  { %s954_s19 = scalar_lea.vmem %s30_s16, 64  ;;  %p959_p1 = scmp.lt.s32.totalorder %s30_s16, %s30_s16 }
   0x6   :  { %p955_p0 = scmp.ne.s32.totalorder %s30_s16, %s954_s19  ;;  %p960_p2 = scmp.lt.s32.totalorder %s954_s19, %s954_s19 }
   0x8   :  { %p961_p3 = por %p960_p2, %p959_p1 }
   0xa   :  { %p962_p4 = pnand %p961_p3, %p955_p0 }
   0xc   :  { %965 = shalt.err (!%p962_p4)
}
   0xd   :  { %32 = dma.hbm_to_vmem [thread:$0]  %s1197_s1, 64, %s30_s16, [#allocation6]  }
   0xe   :  { %s974_s22 = scalar_lea.vmem %s20_s18, 64  ;;  %p979_p6 = scmp.lt.s32.totalorder %s20_s18, %s20_s18 }
   0xf   :  { %p975_p5 = scmp.ne.s32.totalorder %s20_s18, %s974_s22  ;;  %p980_p7 = scmp.lt.s32.totalorder %s974_s22, %s974_s22 }
  0x11   :  { %p981_p8 = por %p980_p7, %p979_p6 }
  0x13   :  { %p982_p9 = pnand %p981_p8, %p975_p5 }
  0x15   :  { %985 = shalt.err (!%p982_p9)
}
  0x16   :  { %22 = dma.hbm_to_vmem [thread:$0]  %s1196_s0, 64, %s20_s18, [#allocation3]  }
  0x17   :  { %s1056_s25 = smov [#allocation7]   ;;  %s1057_s27 = smov [#allocation8]  }
  0x18   :  { %s39_s26 = sshll.u32 %s1056_s25, 4  ;;  %s48_s28 = sshll.u32 %s1057_s27, 4  ;;  %s40_s26 = int_to_ptr.vmem [resolvable:$true] %s39_s26  ;;  %s49_s28 = int_to_ptr.vmem [resolvable:$true] %s48_s28 }
  0x19   :  { %s994_s29 = scalar_lea.vmem %s40_s26, 64  ;;  %p999_p11 = scmp.lt.s32.totalorder %s40_s26, %s40_s26 }
  0x1a   :  { %p995_p10 = scmp.ne.s32.totalorder %s40_s26, %s994_s29  ;;  %p1000_p12 = scmp.lt.s32.totalorder %s994_s29, %s994_s29 }
  0x1c   :  { %p1001_p13 = por %p1000_p12, %p999_p11 }
  0x1e   :  { %p1002_p0 = pnand %p1001_p13, %p995_p10 }
  0x20   :  { %1005 = shalt.err (!%p1002_p0)
}
  0x21   :  { %42 = dma.hbm_to_vmem [thread:$0]  %s1198_s2, 64, %s40_s26, [#allocation6]  }
  0x22   :  { %s1014_s5 = scalar_lea.vmem %s49_s28, 7808  ;;  %p1019_p2 = scmp.lt.s32.totalorder %s49_s28, %s49_s28 }
  0x23   :  { %p1015_p1 = scmp.ne.s32.totalorder %s49_s28, %s1014_s5  ;;  %p1020_p3 = scmp.lt.s32.totalorder %s1014_s5, %s1014_s5 }
  0x25   :  { %p1021_p4 = por %p1020_p3, %p1019_p2 }
  0x27   :  { %p1022_p5 = pnand %p1021_p4, %p1015_p1 }
  0x29   :  { %1025 = shalt.err (!%p1022_p5)
}
  0x2a   :  { %s1058_s0 = smov 128   ;;  %s1059_s6 = smov 8  }
  0x2b   :  { %54 = dma.hbm_to_vmem [thread:$0]  %s1199_s3, 7808, %s49_s28, [#allocation9], %s1058_s0, %s1058_s0, %s1059_s6  }
  0x2c   :  { %1046 = dma.done.wait [#allocation3], 64  }
  0x2d   :  { %1047 = vsyncadd [#allocation3], 4294967232 }
  0x2e   :  { %1048 = dma.done.wait [#allocation6], 128  }
  0x2f   :  { %1049 = vsyncadd [#allocation6], 4294967168 }
  0x30   :  { %1050 = dma.done.wait [#allocation9], 7808  }
  0x31   :  { %1051 = vsyncadd [#allocation9], 4294959488  ;;  %v1060_v0 = vmov 0.0   ;;  %vm1061_vm0 = vmmov 0   ;;  %v88_v1 = vld [vmem:[#allocation8 + $0x78] sm:$0xff]  ;;  %v87_v2 = vld [vmem:[#allocation8 + $0x70] sm:$0xff] }
  0x32   :  { %801 = vmatprep.subr.mxu1 %v1060_v0  ;;  %790 = vmatprep.subr.mxu0 %v1060_v0  ;;  %v86_v3 = vld [vmem:[#allocation8 + $0x68] sm:$0xff]  ;;  %v92_v4 = vld [vmem:[#allocation8 + $0x98] sm:$0xff]  ;;  %v85_v5 = vld [vmem:[#allocation8 + $0x60] sm:$0xff]  ;;  %vm135_vm1 = vcmask 261120   ;;  %vm289_vm2 = vcmask 523264   ;;  %vm363_vm3 = vcmask 31744  }
  0x33   :  { %798 = vmatprep.mubr.msk.f32.mxu0 %vm1061_vm0, %v1060_v0  ;;  %833 = vmatprep.mubr.msk.f32.mxu1 %vm1061_vm0, %v1060_v0  ;;  %v91_v6 = vld [vmem:[#allocation8 + $0x90] sm:$0xff]  ;;  %v90_v7 = vld [vmem:[#allocation8 + $0x88] sm:$0xff]  ;;  %v84_v8 = vld [vmem:[#allocation8 + $0x58] sm:$0xff]  ;;  %vm378_vm4 = vcmask 1043456   ;;  %s1062_s2 = smov 32   ;;  %s1063_s3 = smov 64  }
  0x34   :  { %802 = vmatpush3.msra.mxu1 %v88_v1  ;;  %791 = vmatpush3.msra.mxu0 %v92_v4  ;;  %v69_v9 = vld [vmem:[#allocation5] sm:$0xf]  ;;  %v89_v10 = vld [vmem:[#allocation8 + $0x80] sm:$0xff]  ;;  %v83_v12 = vld [vmem:[#allocation8 + $0x50] sm:$0xff]  ;;  %vm537_vm5 = vcmask 785408   ;;  %vm616_vm6 = vcmask 64512  }
  0x35   :  { %803 = vmatprep.subr.mxu1 %v1060_v0  ;;  %792 = vmatprep.subr.mxu0 %v1060_v0  ;;  %v1113_v11 = vunpack.c.l.bf16 %v69_v9  ;;  %v82_v13 = vld [vmem:[#allocation8 + $0x48] sm:$0xff]  ;;  %v101_v14 = vld [vmem:[#allocation8 + $0xe0] sm:$0xff]  ;;  %v100_v16 = vld [vmem:[#allocation8 + $0xd8] sm:$0xff]  ;;  %s1064_s9 = smov [#allocation10]  }
  0x36   :  { %804 = vmatpush3.msra.mxu1 %v87_v2  ;;  %793 = vmatpush3.msra.mxu0 %v91_v6  ;;  %v81_v15 = vld [vmem:[#allocation8 + $0x40] sm:$0xff]  ;;  %v80_v17 = vld [vmem:[#allocation8 + $0x38] sm:$0xff]  ;;  %v99_v18 = vld [vmem:[#allocation8 + $0xd0] sm:$0xff]  ;;  %s703_s10 = sshll.u32 %s1064_s9, 4  ;;  %s704_s10 = int_to_ptr.vmem [resolvable:$true] %s703_s10 }
  0x37   :  { %805 = vmatprep.subr.mxu1 %v1060_v0  ;;  %794 = vmatprep.subr.mxu0 %v1060_v0  ;;  %v79_v19 = vld [vmem:[#allocation8 + $0x30] sm:$0xff]  ;;  %v78_v20 = vld [vmem:[#allocation8 + $0x28] sm:$0xff]  ;;  %v77_v21 = vld [vmem:[#allocation8 + $0x20] sm:$0xff]  ;;  %s1026_s11 = scalar_lea.vmem %s704_s10, 128  ;;  %p1031_p7 = scmp.lt.s32.totalorder %s704_s10, %s704_s10 }
  0x38   :  { %806 = vmatpush3.msra.mxu1 %v86_v3  ;;  %795 = vmatpush3.msra.mxu0 %v90_v7  ;;  %v76_v22 = vld [vmem:[#allocation8 + $0x18] sm:$0xff]  ;;  %v75_v23 = vld [vmem:[#allocation8 + $0x10] sm:$0xff]  ;;  %v74_v25 = vld [vmem:[#allocation8 + $0x8] sm:$0xff]  ;;  %p1027_p6 = scmp.ne.s32.totalorder %s704_s10, %s1026_s11  ;;  %p1032_p8 = scmp.lt.s32.totalorder %s1026_s11, %s1026_s11 }
  0x39   :  { %807 = vmatprep.subr.mxu1 %v1060_v0  ;;  %796 = vmatprep.subr.mxu0 %v1060_v0  ;;  %v1133_v24 = vld [vmem:[#allocation2] sm:$0xf]  ;;  %v73_v26 = vld [vmem:[#allocation8] sm:$0xff]  ;;  %v98_v28 = vld [vmem:[#allocation8 + $0xc8] sm:$0xff] }
  0x3a   :  { %808 = vmatpush3.msra.mxu1 %v85_v5  ;;  %797 = vmatpush3.msra.mxu0 %v89_v10  ;;  %v68_v27 = vunpack.c.l.bf16 %v1133_v24  ;;  %v97_v29 = vld [vmem:[#allocation8 + $0xc0] sm:$0xff]  ;;  %v96_v30 = vld [vmem:[#allocation8 + $0xb8] sm:$0xff]  ;;  %v95_v31 = vld [vmem:[#allocation8 + $0xb0] sm:$0xff]  ;;  %p1033_p9 = por %p1032_p8, %p1031_p7 }
  0x3b   :  { %809 = vmatprep.subr.mxu1 %v1060_v0  ;;  %799 = vmatmul.mubr.msk.f32.vlgmr.msra.gmra.mxu0 %vm135_vm1, %v1113_v11  ;;  %v94_v32 = vld [vmem:[#allocation8 + $0xa8] sm:$0xff]  ;;  %v715_v35 = vld [vmem:[#allocation8 + $0xa0] ss:$0 sm:$0xff]  ;;  %v103_v51 = vld [vmem:[#allocation8 + $0xf0] sm:$0xf] }
  0x3c   :  { %810 = vmatpush3.msra.mxu1 %v84_v8  ;;  %836 = vmatprep.subr.mxu0 %v1060_v0  ;;  %v716_v41 = vld [vmem:[#allocation8 + $0xe8] ss:$0 sm:$0xff]  ;;  %v119_v55 = vld [vmem:[#allocation8 + $0x170] sm:$0xff]  ;;  %v117_v57 = vld [vmem:[#allocation8 + $0x160] sm:$0xff]  ;;  %p1034_p10 = pnand %p1033_p9, %p1027_p6 }
  0x3d   :  { %811 = vmatprep.subr.mxu1 %v1060_v0  ;;  %837 = vmatpush3.msra.mxu0 %v101_v14  ;;  %v118_v56 = vld [vmem:[#allocation8 + $0x168] sm:$0xff]  ;;  %v116_v58 = vld [vmem:[#allocation8 + $0x158] sm:$0xff]  ;;  %v115_v59 = vld [vmem:[#allocation8 + $0x150] sm:$0xff] }
  0x3e   :  { %812 = vmatpush3.msra.mxu1 %v83_v12  ;;  %838 = vmatprep.subr.mxu0 %v1060_v0  ;;  %v114_v60 = vld [vmem:[#allocation8 + $0x148] sm:$0xff]  ;;  %v113_v61 = vld [vmem:[#allocation8 + $0x140] sm:$0xff]  ;;  %v112_v62 = vld [vmem:[#allocation8 + $0x138] sm:$0xff] }
  0x3f   :  { %813 = vmatprep.subr.mxu1 %v1060_v0  ;;  %839 = vmatpush3.msra.mxu0 %v100_v16  ;;  %v111_v63 = vld [vmem:[#allocation8 + $0x130] sm:$0xff]  ;;  %v110_v1 = vld [vmem:[#allocation8 + $0x128] sm:$0xff]  ;;  %v109_v2 = vld [vmem:[#allocation8 + $0x120] sm:$0xff] }
  0x40   :  { %814 = vmatpush3.msra.mxu1 %v82_v13  ;;  %840 = vmatprep.subr.mxu0 %v1060_v0  ;;  %v108_v3 = vld [vmem:[#allocation8 + $0x118] sm:$0xff]  ;;  %v107_v4 = vld [vmem:[#allocation8 + $0x110] sm:$0xff]  ;;  %v106_v5 = vld [vmem:[#allocation8 + $0x108] sm:$0xff] }
  0x41   :  { %815 = vmatprep.subr.mxu1 %v1060_v0  ;;  %841 = vmatpush3.msra.mxu0 %v99_v18  ;;  %v105_v6 = vld [vmem:[#allocation8 + $0x100] sm:$0xff]  ;;  %v104_v7 = vld [vmem:[#allocation8 + $0xf8] sm:$0xff]  ;;  %v131_v12 = vld [vmem:[#allocation8 + $0x1d0] sm:$0xff] }
  0x42   :  { %816 = vmatpush3.msra.mxu1 %v81_v15  ;;  %842 = vmatprep.subr.mxu0 %v1060_v0  ;;  %v130_v13 = vld [vmem:[#allocation8 + $0x1c8] sm:$0xff]  ;;  %v129_v14 = vld [vmem:[#allocation8 + $0x1c0] sm:$0xff]  ;;  %v128_v15 = vld [vmem:[#allocation8 + $0x1b8] sm:$0xff] }
  0x43   :  { %817 = vmatprep.subr.mxu1 %v1060_v0  ;;  %852 = vmatprep.mubr.msk.f32.mxu0 %vm1061_vm0, %v1060_v0  ;;  %v127_v16 = vld [vmem:[#allocation8 + $0x1b0] sm:$0xff]  ;;  %v125_v18 = vld [vmem:[#allocation8 + $0x1a0] sm:$0xff]  ;;  %v71_v24 = vld [vmem:[#allocation7] sm:$0xf] }
  0x44   :  { %818 = vmatpush3.msra.mxu1 %v80_v17  ;;  %843 = vmatpush3.msra.mxu0 %v98_v28  ;;  %v126_v17 = vld [vmem:[#allocation8 + $0x1a8] sm:$0xff] }
  0x45   :  { %819 = vmatprep.subr.mxu1 %v1060_v0  ;;  %844 = vmatprep.subr.mxu0 %v1060_v0 }
  0x46   :  { %820 = vmatpush3.msra.mxu1 %v79_v19  ;;  %845 = vmatpush3.msra.mxu0 %v97_v29  ;;  %v124_v19 = vld [vmem:[#allocation8 + $0x198] sm:$0xff] }
  0x47   :  { %821 = vmatprep.subr.mxu1 %v1060_v0  ;;  %846 = vmatprep.subr.mxu0 %v1060_v0 }
  0x48   :  { %822 = vmatpush3.msra.mxu1 %v78_v20  ;;  %847 = vmatpush3.msra.mxu0 %v96_v30  ;;  %v123_v20 = vld [vmem:[#allocation8 + $0x190] sm:$0xff] }
  0x49   :  { %823 = vmatprep.subr.mxu1 %v1060_v0  ;;  %848 = vmatprep.subr.mxu0 %v1060_v0 }
  0x4a   :  { %824 = vmatpush3.msra.mxu1 %v77_v21  ;;  %849 = vmatpush3.msra.mxu0 %v95_v31  ;;  %v122_v21 = vld [vmem:[#allocation8 + $0x188] sm:$0xff] }
  0x4b   :  { %825 = vmatprep.subr.mxu1 %v1060_v0  ;;  %850 = vmatprep.subr.mxu0 %v1060_v0 }
  0x4c   :  { %826 = vmatpush3.msra.mxu1 %v76_v22  ;;  %851 = vmatpush3.msra.mxu0 %v94_v32  ;;  %v121_v22 = vld [vmem:[#allocation8 + $0x180] sm:$0xff] }
  0x4d   :  { %827 = vmatprep.subr.mxu1 %v1060_v0  ;;  %855 = vmatprep.subr.mxu0 %v1060_v0 }
  0x4e   :  { %828 = vmatpush3.msra.mxu1 %v75_v23  ;;  %v120_v23 = vld [vmem:[#allocation8 + $0x178] sm:$0xff] }
  0x4f   :  { %829 = vmatprep.subr.mxu1 %v1060_v0 }
  0x50   :  { %830 = vmatpush3.msra.mxu1 %v74_v25  ;;  %v72_v25 = vunpack.c.l.bf16 %v71_v24 }
  0x51   :  { %831 = vmatprep.subr.mxu1 %v1060_v0 }
  0x52   :  { %832 = vmatpush3.msra.mxu1 %v73_v26 }
  0x53   :  { %834 = vmatmul.mubr.f32.vlgmr.msra.gmra.mxu1 %v68_v27  ;;  %895 = vmatprep.subr.mxu1 %v1060_v0 }
  0x54   :  { %919 = vmatprep.mubr.msk.f32.mxu1 %vm1061_vm0, %v1060_v0  ;;  %896 = vmatpush3.msra.mxu1 %v131_v12 }
  0x55   :  { %897 = vmatprep.subr.mxu1 %v1060_v0 }
  0x56   :  { %898 = vmatpush3.msra.mxu1 %v130_v13 }
  0x57   :  { %899 = vmatprep.subr.mxu1 %v1060_v0 }
  0x58   :  { %900 = vmatpush3.msra.mxu1 %v129_v14 }
  0x59   :  { %901 = vmatprep.subr.mxu1 %v1060_v0 }
  0x5a   :  { %902 = vmatpush3.msra.mxu1 %v128_v15 }
  0x5b   :  { %903 = vmatprep.subr.mxu1 %v1060_v0 }
  0x5c   :  { %904 = vmatpush3.msra.mxu1 %v127_v16 }
  0x5d   :  { %905 = vmatprep.subr.mxu1 %v1060_v0 }
  0x5e   :  { %906 = vmatpush3.msra.mxu1 %v126_v17 }
  0x5f   :  { %907 = vmatprep.subr.mxu1 %v1060_v0 }
  0x60   :  { %908 = vmatpush3.msra.mxu1 %v125_v18 }
  0x61   :  { %909 = vmatprep.subr.mxu1 %v1060_v0 }
  0x62   :  { %910 = vmatpush3.msra.mxu1 %v124_v19 }
  0x63   :  { %911 = vmatprep.subr.mxu1 %v1060_v0 }
  0x64   :  { %912 = vmatpush3.msra.mxu1 %v123_v20 }
  0x65   :  { %913 = vmatprep.subr.mxu1 %v1060_v0 }
  0x66   :  { %914 = vmatpush3.msra.mxu1 %v122_v21 }
  0x67   :  { %915 = vmatprep.subr.mxu1 %v1060_v0 }
  0x68   :  { %916 = vmatpush3.msra.mxu1 %v121_v22 }
  0x69   :  { %917 = vmatprep.subr.mxu1 %v1060_v0 }
  0x6a   :  { %918 = vmatpush3.msra.mxu1 %v120_v23 }
  0x6b   :  { %922 = vmatprep.subr.mxu1 %v1060_v0 }
  0xfb   :  { %v205_v33 = vpop.f32.mrf.mxu0 }
  0xfd   :  { %v800_v34 = vpop.f32.mrf.mxu0 }
  0xfe   :  { %v134_v34 = vld [vmem:[#allocation8 + $0x1e0] sm:$0xff] }
 0x113   :  { %v275_v36 = vpop.f32.mrf.mxu1 }
 0x114   :  { %v276_v37 = vadd.f32 %v275_v36, %v205_v33 }
 0x115   :  { %v835_v38 = vpop.f32.mrf.mxu1 }
 0x116   :  { %v283_v39 = vadd.f32 %v715_v35, %v276_v37  ;;  %v720_v35 = vld [vmem:[#allocation8 + $0x1d8] ss:$0 sm:$0xff] }
 0x118   :  { %v284_v40 = vmax.f32 %v283_v39, 0.0 }
 0x11a   :  { %853 = vmatmul.mubr.msk.f32.vlgmr.msra.gmra.mxu0 %vm289_vm2, %v284_v40 }
 0x11b   :  { %857 = vmatprep.mubr.msk.f32.mxu0 %vm1061_vm0, %v1060_v0  ;;  %856 = vmatpush3.msk.msra.mxu0 %vm378_vm4, %v103_v51 }
 0x11c   :  { %860 = vmatprep.subr.mxu0 %v1060_v0 }
 0x1da   :  { %v359_v42 = vpop.f32.mrf.mxu0 }
 0x1db   :  { %v360_v43 = vadd.f32 %v716_v41, %v359_v42 }
 0x1dc   :  { %v854_v44 = vpop.f32.mrf.mxu0 }
 0x1dd   :  { %v364_v45 = vsel %vm363_vm3, %v360_v43, -inf }
 0x1de   :  { %365 = vmax.xlane.f32.xlu0 %v364_v45 }
 0x267   :  { %v366_v46 = vpop.xlane.xlu0 %365 }
 0x268   :  { %v367_v47 = vsub.f32 %v360_v43, %v366_v46 }
 0x26a   :  { %v368_v48 = vmul.f32 1.442695, %v367_v47 }
 0x26c   :  { %938 = vpow2.f32 %v368_v48 }
 0x279   :  { %v939_v49 = vpop.eup %938 }
 0x27a   :  { %v370_v50 = vsel %vm363_vm3, %v939_v49, 0.0 }
 0x27b   :  { %371 = vadd.xlane.f32.xlu0 %v370_v50 }
 0x304   :  { %v372_v52 = vpop.xlane.xlu0 %371 }
 0x305   :  { %940 = vrcp.f32 %v372_v52 }
 0x312   :  { %v941_v53 = vpop.eup %940 }
 0x313   :  { %v374_v54 = vmul.f32 %v941_v53, %v939_v49 }
 0x315   :  { %858 = vmatmul.mubr.msk.f32.vlgmr.msra.gmra.mxu0 %vm363_vm3, %v374_v54 }
 0x316   :  { %861 = vmatpush3.msra.mxu0 %v119_v55  ;;  %892 = vmatprep.mubr.msk.f32.mxu0 %vm1061_vm0, %v1060_v0 }
 0x317   :  { %862 = vmatprep.subr.mxu0 %v1060_v0 }
 0x318   :  { %863 = vmatpush3.msra.mxu0 %v118_v56 }
 0x319   :  { %864 = vmatprep.subr.mxu0 %v1060_v0 }
 0x31a   :  { %865 = vmatpush3.msra.mxu0 %v117_v57 }
 0x31b   :  { %866 = vmatprep.subr.mxu0 %v1060_v0 }
 0x31c   :  { %867 = vmatpush3.msra.mxu0 %v116_v58 }
 0x31d   :  { %868 = vmatprep.subr.mxu0 %v1060_v0 }
 0x31e   :  { %869 = vmatpush3.msra.mxu0 %v115_v59 }
 0x31f   :  { %870 = vmatprep.subr.mxu0 %v1060_v0 }
 0x320   :  { %871 = vmatpush3.msra.mxu0 %v114_v60 }
 0x321   :  { %872 = vmatprep.subr.mxu0 %v1060_v0 }
 0x322   :  { %873 = vmatpush3.msra.mxu0 %v113_v61 }
 0x323   :  { %874 = vmatprep.subr.mxu0 %v1060_v0 }
 0x324   :  { %875 = vmatpush3.msra.mxu0 %v112_v62 }
 0x325   :  { %876 = vmatprep.subr.mxu0 %v1060_v0 }
 0x326   :  { %877 = vmatpush3.msra.mxu0 %v111_v63 }
 0x327   :  { %878 = vmatprep.subr.mxu0 %v1060_v0 }
 0x328   :  { %879 = vmatpush3.msra.mxu0 %v110_v1 }
 0x329   :  { %880 = vmatprep.subr.mxu0 %v1060_v0 }
 0x32a   :  { %881 = vmatpush3.msra.mxu0 %v109_v2 }
 0x32b   :  { %882 = vmatprep.subr.mxu0 %v1060_v0 }
 0x32c   :  { %883 = vmatpush3.msra.mxu0 %v108_v3 }
 0x32d   :  { %884 = vmatprep.subr.mxu0 %v1060_v0 }
 0x32e   :  { %885 = vmatpush3.msra.mxu0 %v107_v4 }
 0x32f   :  { %886 = vmatprep.subr.mxu0 %v1060_v0 }
 0x330   :  { %887 = vmatpush3.msra.mxu0 %v106_v5 }
 0x331   :  { %888 = vmatprep.subr.mxu0 %v1060_v0 }
 0x332   :  { %889 = vmatpush3.msra.mxu0 %v105_v6 }
 0x333   :  { %890 = vmatprep.subr.mxu0 %v1060_v0 }
 0x334   :  { %891 = vmatpush3.msra.mxu0 %v104_v7 }
 0x3d5   :  { %v448_v8 = vpop.f32.mrf.mxu0 }
 0x3d6   :  { %v452_v9 = vmul.f32 %v448_v8, %v68_v27 }
 0x3d7   :  { %v859_v10 = vpop.f32.mrf.mxu0 }
 0x3d8   :  { %893 = vmatmul.mubr.f32.vlgmr.msra.gmra.mxu0 %v452_v9 }
 0x498   :  { %v519_v26 = vpop.f32.mrf.mxu0 }
 0x499   :  { %v520_v27 = vadd.f32 %v519_v26, %v72_v25 }
 0x49a   :  { %v894_v28 = vpop.f32.mrf.mxu0 }
 0x49b   :  { %525 = vrot.lane.b32.xlu1 %v520_v27, %s1062_s2  ;;  %v523_v30 = vmul.f32 %v520_v27, %v1113_v11 }
 0x49f   :  { %528 = vrot.lane.b32.xlu1 %v1113_v11, %s1063_s3  ;;  %v722_v11 = vld [vmem:[#allocation8 + $0x1d9] ss:$0 sm:$0xff] }
 0x50d   :  { %v526_v29 = vpop.permute.xlu1 %525 }
 0x50e   :  { %v531_v31 = vsel %vm135_vm1, %v523_v30, %v526_v29 }
 0x511   :  { %v529_v32 = vpop.permute.xlu1 %528 }
 0x512   :  { %v532_v33 = vsel %vm289_vm2, %v531_v31, %v529_v32 }
 0x513   :  { %920 = vmatmul.mubr.msk.f32.vlgmr.msra.gmra.mxu1 %vm537_vm5, %v532_v33 }
 0x514   :  { %924 = vmatprep.mubr.msk.f32.mxu1 %vm1061_vm0, %v1060_v0  ;;  %923 = vmatpush3.msra.mxu1 %v134_v34 }
 0x5d3   :  { %v607_v36 = vpop.f32.mrf.mxu1 }
 0x5d4   :  { %v608_v37 = vadd.f32 %v720_v35, %v607_v36 }
 0x5d5   :  { %v921_v38 = vpop.f32.mrf.mxu1 }
 0x5d6   :  { %v611_v39 = vmax.f32 %v608_v37, 0.0 }
 0x5d8   :  { %925 = vmatmul.mubr.msk.f32.vlgmr.msra.gmra.mxu1 %vm616_vm6, %v611_v39 }
 0x698   :  { %v686_v40 = vpop.f32.mrf.mxu1 }
 0x699   :  { %v687_v41 = vadd.f32 %v722_v11, %v686_v40 }
 0x69a   :  { %v926_v42 = vpop.f32.mrf.mxu1 }
 0x69b   :  { %v724_v43 = vmul.f32 -1.442695, %v687_v41 }
 0x69d   :  { %942 = vpow2.f32 %v724_v43 }
 0x6aa   :  { %v943_v44 = vpop.eup %942 }
 0x6ab   :  { %v693_v45 = vadd.f32 1.0, %v943_v44 }
 0x6ad   :  { %944 = vrcp.f32 %v693_v45 }
 0x6ba   :  { %v945_v0 = vpop.eup %944 }
 0x6bb   :  { %696 = vst [vmem:[#allocation10] sm:$0xff] %v945_v0 }
 0x6bc   :  { %1037 = shalt.err (!%p1034_p10)
}
 0x6bd   :  { %706 = dma.vmem_to_hbm [thread:$0]  %s704_s10, 128, %s1200_s4, [#allocation4]  }
 0x6be   :  { %1052 = dma.done.wait [#allocation4], 128  }
 0x6bf   :  { %1053 = vsyncadd [#allocation4], 4294967168 }
 0x6c0   :  { %710 = vsyncpa [#allocation3], 1 }
 0x6c1   :  { %711 = vsyncpa [#allocation6], 1 }
 0x6c2   :  { %712 = vsyncpa [#allocation9], 1 }
 0x6c3   :  { %713 = vsyncpa [#allocation4], 1 }

</bundles_post_ra>
